<compile_context>
chip_gen: v7x
topology: tpu7x:2x2x1
jax: 0.10.0
libtpu: 0.0.40
codegen_flags: <defaults>
</compile_context>

<pallas_src>
import jax
import jax.numpy as jnp
from jax import lax
from jax.experimental import pallas as pl
from jax.experimental.pallas import tpu as pltpu


# Set these to jnp.float32 for closer bit-level parity with PyTorch
# (F.interpolate / torch.sigmoid in f32).  bf16 is exact for 0/1 target masks and
# within ~1e-3 relative on the scalar loss for soft values.
_MXU_DTYPE = jnp.bfloat16   # predictions + interpolation weights (f32 MXU accum)
_TGT_DTYPE = jnp.bfloat16   # target mask
_ACT_DTYPE = jnp.bfloat16   # sigmoid / product dtype (use float32 on v5e: no bf16 EUP)

# TODO(synk): TpuInfo does not portably expose the TensorCore count; set this to 2
# on v7x-class parts to force the CORE_PARALLEL split across TensorCores.
_FORCE_NUM_CORES = None


def _itemsize(dt):
    return jnp.finfo(dt).bits // 8


def _tpu_config():
    """Generation-aware VMEM / tiling budgets (128-MiB v5e/v6e vs 64-MiB v7x TC)."""
    vmem_cap, n_cores = None, _FORCE_NUM_CORES
    try:
        info = pltpu.get_tpu_info()
        vmem_cap = int(info.vmem_capacity_bytes)
        if n_cores is None:
            for attr in ("num_tensorcores", "tensorcore_count", "num_cores",
                         "core_count"):
                v = getattr(info, attr, None)
                if isinstance(v, int) and v >= 1:
                    n_cores = v
                    break
    except Exception:
        pass
    vmem_cap = 64 * 1024 * 1024 if vmem_cap is None else vmem_cap
    n_cores = 1 if n_cores is None else max(1, min(2, int(n_cores)))
    if vmem_cap >= 96 * 1024 * 1024:            # 128-MiB parts: v5e / v6e
        return dict(vmem_limit=96 << 20, tb_budget=48 << 20, tb_max=64,
                    tgt_buffers=3, num_cores=n_cores)
    return dict(vmem_limit=44 << 20, tb_budget=20 << 20, tb_max=16,  # v7x / unknown
                tgt_buffers=2, num_cores=n_cores)


def _interp_matrix(out_size, in_size):
    """Row-stochastic (out_size, in_size) 1-D bilinear weights (align_corners=True),
    so F.interpolate(mode='bilinear', align_corners=True) == Wh @ X @ Ww.T."""
    if out_size == 1:
        src = jnp.zeros((1,), dtype=jnp.float32)
    else:
        src = (jnp.arange(out_size, dtype=jnp.float32)
               * (in_size - 1) / (out_size - 1))
    lo = jnp.clip(jnp.floor(src).astype(jnp.int32), 0, in_size - 1)
    hi = jnp.clip(lo + 1, 0, in_size - 1)
    frac = src - lo.astype(jnp.float32)
    cols = jnp.arange(in_size)
    w = ((cols[None, :] == lo[:, None]).astype(jnp.float32) * (1.0 - frac)[:, None]
         + (cols[None, :] == hi[:, None]).astype(jnp.float32) * frac[:, None])
    return w


def _make_kernel(n_stages, tb, n_chunks, chunk, W, act_dtype):
    n_rows = 2 * n_stages + 1
    unroll_chunks = bool(n_chunks <= 16)

    def kernel(*refs):
        in_refs = refs[:3 * n_stages + 1]
        out_ref = refs[3 * n_stages + 1]
        tgt_ref = in_refs[-1]

        @pl.when(pl.program_id(1) == 0)
        def _():
            out_ref[...] = jnp.zeros_like(out_ref)

        # Small loop-invariant loads hoisted out of the slice loop.
        wwt_vals = [in_refs[3 * s + 2][...] for s in range(n_stages)]

        zero = jnp.zeros((8, W), jnp.float32)
        init = (zero,) * n_rows

        def slice_body(i, accs):
            # Stage A: W-direction interpolation for slice i (one MXU matmul/stage).
            a_is = []
            for s in range(n_stages):
                p_i = in_refs[3 * s][i]                               # (h_s, w_s)
                a_i = jnp.dot(p_i, wwt_vals[s],
                              preferred_element_type=jnp.float32)     # (h_s, W)
                a_is.append(a_i.astype(act_dtype))

            # Stage B: H-direction interpolation in `chunk`-row tiles; sigmoid,
            # product with target, and sublane-preserving (8, W) partial sums are
            # fused while the chunk is hot (no full (H, W) temporaries).
            def chunk_body(k, accs):
                accs = list(accs)
                r0 = pl.multiple_of(k * chunk, chunk)
                t_c = tgt_ref[i, pl.ds(r0, chunk), :].astype(act_dtype)  # (chunk, W)
                for s in range(n_stages):
                    wh_c = in_refs[3 * s + 1][pl.ds(r0, chunk), :]       # (chunk, h_s)
                    up = jnp.dot(wh_c, a_is[s],
                                 preferred_element_type=jnp.float32)     # (chunk, W)
                    # sigmoid(x) = 0.5*tanh(0.5*x) + 0.5 -> single EUP op.
                    sp = jnp.tanh(up.astype(act_dtype) * 0.5) * 0.5 + 0.5
                    inter = sp * t_c
                    accs[2 * s] = accs[2 * s] + jnp.sum(
                        inter.astype(jnp.float32).reshape(chunk // 8, 8, W), axis=0)
                    accs[2 * s + 1] = accs[2 * s + 1] + jnp.sum(
                        sp.astype(jnp.float32).reshape(chunk // 8, 8, W), axis=0)
                accs[-1] = accs[-1] + jnp.sum(
                    t_c.astype(jnp.float32).reshape(chunk // 8, 8, W), axis=0)
                return tuple(accs)

            return lax.fori_loop(0, n_chunks, chunk_body, accs,
                                 unroll=unroll_chunks)

        accs = lax.fori_loop(0, tb, slice_body, init)

        # Accumulate into the resident (1, n_rows, 8, W) output block — full
        # 8-sublane stores; the cross-sublane/lane reduce happens outside.
        for q in range(n_rows):
            out_ref[0, q] = out_ref[0, q] + accs[q]

    return kernel


def _fused_dice_sums(preds, target):
    """preds: list of (N, C, h_i, w_i) logits; target: (N, C, H, W) mask.
    Returns ([(sum(sig(up(p_i))*t), sum(sig(up(p_i)))) per stage], sum(t))."""
    n_stages = len(preds)
    n, c, H, W = target.shape
    nb = n * c
    pred_shapes = [(int(p.shape[2]), int(p.shape[3])) for p in preds]
    cfg = _tpu_config()

    # ---- H padding (multiple of 8 so chunk partial sums stay sublane aligned) ---
    H_p = ((H + 7) // 8) * 8
    chunk = 8
    for cand in range(64, 7, -8):        # largest multiple-of-8 divisor of H_p <= 64
        if H_p % cand == 0:
            chunk = cand
            break
    n_chunks = H_p // chunk

    # ---- batch tile selection (generation-aware VMEM budget) --------------------
    pred_b = _itemsize(_MXU_DTYPE)
    tgt_b = _itemsize(_TGT_DTYPE)
    act_b = _itemsize(_ACT_DTYPE)
    bytes_per_slice = (cfg["tgt_buffers"] * H_p * W * tgt_b
                       + 2 * sum(h * w for h, w in pred_shapes) * pred_b)
    fixed = (4 * chunk * W * 4                                    # chunk temporaries
             + sum(h for h, _ in pred_shapes) * W * (4 + act_b)   # per-slice a_i
             + 2 * (2 * n_stages + 1) * 8 * W * 4                 # accums + out block
             + 2 * sum(H_p * h + w * W for h, w in pred_shapes) * pred_b
             + (2 << 20))                                         # slack
    tb = int(max(1, min(cfg["tb_max"], nb,
                        (cfg["tb_budget"] - fixed) // max(bytes_per_slice, 1))))

    total_steps = pl.cdiv(nb, tb)
    num_cores = cfg["num_cores"] if (cfg["num_cores"] > 1 and total_steps > 1) else 1
    steps_per_core = pl.cdiv(total_steps, num_cores)
    padded_nb = num_cores * steps_per_core * tb

    def pad_batch(x):
        pad = padded_nb - x.shape[0]
        return x if pad == 0 else jnp.pad(x, ((0, pad),) + ((0, 0),) * (x.ndim - 1))

    batch_map = lambda cc, bb: (cc * steps_per_core + bb, 0, 0)
    const2_map = lambda cc, bb: (0, 0)

    inputs, in_specs = [], []
    for p, (h, w) in zip(preds, pred_shapes):
        p_nb = pad_batch(p.reshape(nb, h, w).astype(_MXU_DTYPE))
        wh = jnp.pad(_interp_matrix(H, h),
                     ((0, H_p - H), (0, 0))).astype(_MXU_DTYPE)     # (H_p, h)
        wwt = _interp_matrix(W, w).T.astype(_MXU_DTYPE)             # (w, W)
        inputs += [p_nb, wh, wwt]
        in_specs += [pl.BlockSpec((tb, h, w), batch_map),
                     pl.BlockSpec((H_p, h), const2_map),
                     pl.BlockSpec((w, W), const2_map)]

    tgt = pad_batch(target.reshape(nb, H, W).astype(_TGT_DTYPE))
    tgt = jnp.pad(tgt, ((0, 0), (0, H_p - H), (0, 0)))
    inputs.append(tgt)
    tgt_kwargs = {}
    if cfg["tgt_buffers"] > 2 and steps_per_core > 2:
        # Triple-buffer the dominant, memory-bound target stream where the
        # 128-MiB parts (v5e/v6e) have the headroom.
        tgt_kwargs["pipeline_mode"] = pl.Buffered(cfg["tgt_buffers"])
    in_specs.append(pl.BlockSpec((tb, H_p, W), batch_map, **tgt_kwargs))

    n_rows = 2 * n_stages + 1
    kernel = _make_kernel(n_stages, tb, n_chunks, chunk, W, _ACT_DTYPE)

    if num_cores > 1:
        dims = (pltpu.CORE_PARALLEL, pltpu.ARBITRARY)   # real v7x TensorCore split
    else:
        dims = ("arbitrary", "arbitrary")

    partials = pl.pallas_call(
        kernel,
        out_shape=jax.ShapeDtypeStruct((num_cores, n_rows, 8, W), jnp.float32),
        grid_spec=pltpu.PrefetchScalarGridSpec(
            num_scalar_prefetch=0,
            grid=(num_cores, steps_per_core),
            in_specs=in_specs,
            out_specs=pl.BlockSpec((1, n_rows, 8, W),
                                   lambda cc, bb: (cc, 0, 0, 0)),
        ),
        compiler_params=pltpu.CompilerParams(
            dimension_semantics=dims,
            vmem_limit_bytes=cfg["vmem_limit"]),
    )(*inputs)

    # Single cross-core / cross-sublane / cross-lane reduction in plain JAX.
    sums = jnp.sum(partials, axis=(0, 2, 3))            # (n_rows,)
    # Every padded pred row / padded batch slice contributes exactly
    # sigmoid(0) = 0.5 to sum_pred (and 0 to intersection / sum_true); remove it
    # in closed form instead of masking inside the kernel.
    pad_corr = 0.5 * float(padded_nb * H_p - nb * H) * float(W)
    stage_sums = [(sums[2 * s], sums[2 * s + 1] - pad_corr)
                  for s in range(n_stages)]
    return stage_sums, sums[2 * n_stages]


def _dice_loss_from_sums(intersection, sum_pred, sum_true):
    smooth = 1.0
    dice_coef = 2.0 * (intersection + smooth) / (sum_true + sum_pred + smooth)
    return 1.0 - dice_coef


def criterion_scaled_dice(preds, target, stages=2):
    """JAX/Pallas equivalent of CriterionScaledDice.forward.
    preds: list of NCHW logits; target: NCHW mask."""
    if len(preds) >= 2 and stages == 2:
        stage_sums, t_sum = _fused_dice_sums([preds[0], preds[1]], target)
        (i0, p0), (i1, p1) = stage_sums
        loss1 = _dice_loss_from_sums(i0, p0, t_sum)
        loss2 = _dice_loss_from_sums(i1, p1, t_sum)
        return loss1 + loss2 * 0.4
    elif len(preds) == 1 or stages == 1:
        stage_sums, t_sum = _fused_dice_sums([preds[0]], target)
        (i0, p0), = stage_sums
        return _dice_loss_from_sums(i0, p0, t_sum)
    else:
        raise ValueError("unsupported preds/stages combination")


if __name__ == "__main__":
    key = jax.random.PRNGKey(0)
    k1, k2, k3 = jax.random.split(key, 3)

    # Small shapes consistent with the module: 2 prediction stages at lower
    # resolution, target at (16, 16).
    pred0 = jax.random.normal(k1, (2, 1, 8, 8), dtype=jnp.float32)
    pred1 = jax.random.normal(k2, (2, 1, 4, 4), dtype=jnp.float32)
    target = (jax.random.uniform(k3, (2, 1, 16, 16)) > 0.5).astype(jnp.float32)

    loss = criterion_scaled_dice([pred0, pred1], target, stages=2)
    jax.block_until_ready(loss)
    print("KERNEL_OK")
</pallas_src>

<mosaic_0001>
module attributes {stable_mosaic.version = 11 : i64} {
  func.func @kernel(%arg0: i32, %arg1: i32, %arg2: memref<2x8x8xbf16, #tpu.memory_space<vmem>>, %arg3: memref<16x8xbf16, #tpu.memory_space<vmem>>, %arg4: memref<8x16xbf16, #tpu.memory_space<vmem>>, %arg5: memref<2x4x4xbf16, #tpu.memory_space<vmem>>, %arg6: memref<16x4xbf16, #tpu.memory_space<vmem>>, %arg7: memref<4x16xbf16, #tpu.memory_space<vmem>>, %arg8: memref<2x16x16xbf16, #tpu.memory_space<vmem>>, %arg9: memref<1x5x8x16xf32, #tpu.memory_space<vmem>>) attributes {dimension_semantics = [#tpu.dimension_semantics<arbitrary>, #tpu.dimension_semantics<arbitrary>], iteration_bounds = array<i64: 1, 1>, scalar_prefetch = 0 : i64, scratch_operands = 0 : i64, tpu.core_type = #tpu.core_type<tc>, window_params = [{transform_indices = @transform_0, window_bounds = array<i64: 2, 8, 8>}, {pipeline_mode = #tpu.pipeline_mode<synchronous>, transform_indices = @transform_1, window_bounds = array<i64: 16, 8>}, {pipeline_mode = #tpu.pipeline_mode<synchronous>, transform_indices = @transform_2, window_bounds = array<i64: 8, 16>}, {transform_indices = @transform_3, window_bounds = array<i64: 2, 4, 4>}, {pipeline_mode = #tpu.pipeline_mode<synchronous>, transform_indices = @transform_4, window_bounds = array<i64: 16, 4>}, {pipeline_mode = #tpu.pipeline_mode<synchronous>, transform_indices = @transform_5, window_bounds = array<i64: 4, 16>}, {transform_indices = @transform_6, window_bounds = array<i64: 2, 16, 16>}, {transform_indices = @transform_7, window_bounds = array<i64: 1, 5, 8, 16>}]} {
    %c0_i32 = arith.constant 0 : i32
    %0 = arith.cmpi eq, %arg1, %c0_i32 : i32
    %1 = arith.extui %0 : i1 to i32
    %c0_i32_0 = arith.constant 0 : i32
    %2 = arith.cmpi ne, %1, %c0_i32_0 : i32
    scf.if %2 {
      %cst_42 = arith.constant 0.000000e+00 : f32
      %38 = vector.broadcast %cst_42 : f32 to vector<1x5x8x16xf32>
      %c0_43 = arith.constant 0 : index
      %c0_44 = arith.constant 0 : index
      %c0_45 = arith.constant 0 : index
      %c0_46 = arith.constant 0 : index
      %39 = vector.load %arg9[%c0_43, %c0_44, %c0_45, %c0_46] : memref<1x5x8x16xf32, #tpu.memory_space<vmem>>, vector<1x5x8x16xf32>
      tpu.vector_store %arg9[%c0_43, %c0_44, %c0_45, %c0_46], %38 {strides = array<i32>} : memref<1x5x8x16xf32, #tpu.memory_space<vmem>>, vector<1x5x8x16xf32>,
    } else {
    }
    %c0 = arith.constant 0 : index
    %c0_1 = arith.constant 0 : index
    %3 = vector.load %arg4[%c0, %c0_1] : memref<8x16xbf16, #tpu.memory_space<vmem>>, vector<8x16xbf16>
    %c0_2 = arith.constant 0 : index
    %c0_3 = arith.constant 0 : index
    %4 = vector.load %arg7[%c0_2, %c0_3] : memref<4x16xbf16, #tpu.memory_space<vmem>>, vector<4x16xbf16>
    %cst = arith.constant 0.000000e+00 : f32
    %5 = vector.broadcast %cst : f32 to vector<8x16xf32>
    %c0_i32_4 = arith.constant 0 : i32
    %c2_i32 = arith.constant 2 : i32
    %6 = arith.addi %c0_i32_4, %c2_i32 : i32
    %c1_i32 = arith.constant 1 : i32
    %7:5 = scf.for %arg10 = %c0_i32_4 to %6 step %c1_i32 iter_args(%arg11 = %5, %arg12 = %5, %arg13 = %5, %arg14 = %5, %arg15 = %5) -> (vector<8x16xf32>, vector<8x16xf32>, vector<8x16xf32>, vector<8x16xf32>, vector<8x16xf32>)  : i32 {
      %38 = arith.index_cast %arg10 : i32 to index
      %c0_42 = arith.constant 0 : index
      %c0_43 = arith.constant 0 : index
      %39 = vector.load %arg2[%38, %c0_42, %c0_43] : memref<2x8x8xbf16, #tpu.memory_space<vmem>>, vector<1x8x8xbf16>
      %40 = vector.shape_cast %39 : vector<1x8x8xbf16> to vector<8x8xbf16>
      %cst_44 = arith.constant dense<0.000000e+00> : vector<8x16xf32>
      %41 = tpu.matmul %40, %3, %cst_44 {dimension_numbers = #tpu.dot_dimension_numbers<[1], [0], [0], [1], [0, 0, 1, 1], [], []>} : vector<8x8xbf16>, vector<8x16xbf16>, vector<8x16xf32> -> vector<8x16xf32>
      %42 = arith.truncf %41 : vector<8x16xf32> to vector<8x16xbf16>
      %43 = arith.index_cast %arg10 : i32 to index
      %c0_45 = arith.constant 0 : index
      %c0_46 = arith.constant 0 : index
      %44 = vector.load %arg5[%43, %c0_45, %c0_46] : memref<2x4x4xbf16, #tpu.memory_space<vmem>>, vector<1x4x4xbf16>
      %45 = vector.shape_cast %44 : vector<1x4x4xbf16> to vector<4x4xbf16>
      %cst_47 = arith.constant dense<0.000000e+00> : vector<4x16xf32>
      %46 = tpu.matmul %45, %4, %cst_47 {dimension_numbers = #tpu.dot_dimension_numbers<[1], [0], [0], [1], [0, 0, 1, 1], [], []>} : vector<4x4xbf16>, vector<4x16xbf16>, vector<4x16xf32> -> vector<4x16xf32>
      %47 = arith.truncf %46 : vector<4x16xf32> to vector<4x16xbf16>
      %c0_i32_48 = arith.constant 0 : i32
      %c16_i32 = arith.constant 16 : i32
      %48 = arith.muli %c0_i32_48, %c16_i32 : i32
      %49 = tpu.assume_multiple %48, 16 : i32
      %50 = arith.index_cast %arg10 : i32 to index
      %51 = arith.index_cast %49 : i32 to index
      %c0_49 = arith.constant 0 : index
      %52 = vector.load %arg8[%50, %51, %c0_49] : memref<2x16x16xbf16, #tpu.memory_space<vmem>>, vector<1x16x16xbf16>
      %53 = vector.shape_cast %52 : vector<1x16x16xbf16> to vector<16x16xbf16>
      %54 = arith.index_cast %49 : i32 to index
      %c0_50 = arith.constant 0 : index
      %55 = vector.load %arg3[%54, %c0_50] : memref<16x8xbf16, #tpu.memory_space<vmem>>, vector<16x8xbf16>
      %cst_51 = arith.constant dense<0.000000e+00> : vector<16x16xf32>
      %56 = tpu.matmul %55, %42, %cst_51 {dimension_numbers = #tpu.dot_dimension_numbers<[1], [0], [0], [1], [0, 0, 1, 1], [], []>} : vector<16x8xbf16>, vector<8x16xbf16>, vector<16x16xf32> -> vector<16x16xf32>
      %57 = arith.truncf %56 : vector<16x16xf32> to vector<16x16xbf16>
      %cst_52 = arith.constant 5.000000e-01 : bf16
      %58 = vector.broadcast %cst_52 : bf16 to vector<16x16xbf16>
      %59 = arith.mulf %57, %58 : vector<16x16xbf16>
      %60 = math.tanh %59 : vector<16x16xbf16>
      %cst_53 = arith.constant 5.000000e-01 : bf16
      %61 = vector.broadcast %cst_53 : bf16 to vector<16x16xbf16>
      %62 = arith.mulf %60, %61 : vector<16x16xbf16>
      %cst_54 = arith.constant 5.000000e-01 : bf16
      %63 = vector.broadcast %cst_54 : bf16 to vector<16x16xbf16>
      %64 = arith.addf %62, %63 : vector<16x16xbf16>
      %65 = arith.mulf %64, %53 : vector<16x16xbf16>
      %66 = arith.extf %65 : vector<16x16xbf16> to vector<16x16xf32>
      %67 = vector.shape_cast %66 : vector<16x16xf32> to vector<2x8x16xf32>
      %cst_55 = arith.constant dense<0.000000e+00> : vector<8x16xf32>
      %68 = vector.multi_reduction <add>, %67, %cst_55 [0] : vector<2x8x16xf32> to vector<8x16xf32>
      %69 = arith.addf %arg11, %68 : vector<8x16xf32>
      %70 = arith.extf %64 : vector<16x16xbf16> to vector<16x16xf32>
      %71 = vector.shape_cast %70 : vector<16x16xf32> to vector<2x8x16xf32>
      %cst_56 = arith.constant dense<0.000000e+00> : vector<8x16xf32>
      %72 = vector.multi_reduction <add>, %71, %cst_56 [0] : vector<2x8x16xf32> to vector<8x16xf32>
      %73 = arith.addf %arg12, %72 : vector<8x16xf32>
      %74 = arith.index_cast %49 : i32 to index
      %c0_57 = arith.constant 0 : index
      %75 = vector.load %arg6[%74, %c0_57] : memref<16x4xbf16, #tpu.memory_space<vmem>>, vector<16x4xbf16>
      %cst_58 = arith.constant dense<0.000000e+00> : vector<16x16xf32>
      %76 = tpu.matmul %75, %47, %cst_58 {dimension_numbers = #tpu.dot_dimension_numbers<[1], [0], [0], [1], [0, 0, 1, 1], [], []>} : vector<16x4xbf16>, vector<4x16xbf16>, vector<16x16xf32> -> vector<16x16xf32>
      %77 = arith.truncf %76 : vector<16x16xf32> to vector<16x16xbf16>
      %cst_59 = arith.constant 5.000000e-01 : bf16
      %78 = vector.broadcast %cst_59 : bf16 to vector<16x16xbf16>
      %79 = arith.mulf %77, %78 : vector<16x16xbf16>
      %80 = math.tanh %79 : vector<16x16xbf16>
      %cst_60 = arith.constant 5.000000e-01 : bf16
      %81 = vector.broadcast %cst_60 : bf16 to vector<16x16xbf16>
      %82 = arith.mulf %80, %81 : vector<16x16xbf16>
      %cst_61 = arith.constant 5.000000e-01 : bf16
      %83 = vector.broadcast %cst_61 : bf16 to vector<16x16xbf16>
      %84 = arith.addf %82, %83 : vector<16x16xbf16>
      %85 = arith.mulf %84, %53 : vector<16x16xbf16>
      %86 = arith.extf %85 : vector<16x16xbf16> to vector<16x16xf32>
      %87 = vector.shape_cast %86 : vector<16x16xf32> to vector<2x8x16xf32>
      %cst_62 = arith.constant dense<0.000000e+00> : vector<8x16xf32>
      %88 = vector.multi_reduction <add>, %87, %cst_62 [0] : vector<2x8x16xf32> to vector<8x16xf32>
      %89 = arith.addf %arg13, %88 : vector<8x16xf32>
      %90 = arith.extf %84 : vector<16x16xbf16> to vector<16x16xf32>
      %91 = vector.shape_cast %90 : vector<16x16xf32> to vector<2x8x16xf32>
      %cst_63 = arith.constant dense<0.000000e+00> : vector<8x16xf32>
      %92 = vector.multi_reduction <add>, %91, %cst_63 [0] : vector<2x8x16xf32> to vector<8x16xf32>
      %93 = arith.addf %arg14, %92 : vector<8x16xf32>
      %94 = arith.extf %53 : vector<16x16xbf16> to vector<16x16xf32>
      %95 = vector.shape_cast %94 : vector<16x16xf32> to vector<2x8x16xf32>
      %cst_64 = arith.constant dense<0.000000e+00> : vector<8x16xf32>
      %96 = vector.multi_reduction <add>, %95, %cst_64 [0] : vector<2x8x16xf32> to vector<8x16xf32>
      %97 = arith.addf %arg15, %96 : vector<8x16xf32>
      %c1_i32_65 = arith.constant 1 : i32
      scf.yield %69, %73, %89, %93, %97 : vector<8x16xf32>, vector<8x16xf32>, vector<8x16xf32>, vector<8x16xf32>, vector<8x16xf32>
    }
    %c2_i32_5 = arith.constant 2 : i32
    %c0_6 = arith.constant 0 : index
    %c0_7 = arith.constant 0 : index
    %c0_8 = arith.constant 0 : index
    %c0_9 = arith.constant 0 : index
    %8 = vector.load %arg9[%c0_6, %c0_7, %c0_8, %c0_9] : memref<1x5x8x16xf32, #tpu.memory_space<vmem>>, vector<1x1x8x16xf32>
    %9 = vector.shape_cast %8 : vector<1x1x8x16xf32> to vector<8x16xf32>
    %10 = arith.addf %9, %7#0 : vector<8x16xf32>
    %c0_10 = arith.constant 0 : index
    %c0_11 = arith.constant 0 : index
    %c0_12 = arith.constant 0 : index
    %c0_13 = arith.constant 0 : index
    %11 = vector.load %arg9[%c0_10, %c0_11, %c0_12, %c0_13] : memref<1x5x8x16xf32, #tpu.memory_space<vmem>>, vector<1x1x8x16xf32>
    %12 = vector.shape_cast %11 : vector<1x1x8x16xf32> to vector<8x16xf32>
    %13 = vector.shape_cast %10 : vector<8x16xf32> to vector<1x1x8x16xf32>
    tpu.vector_store %arg9[%c0_10, %c0_11, %c0_12, %c0_13], %13 {strides = array<i32>} : memref<1x5x8x16xf32, #tpu.memory_space<vmem>>, vector<1x1x8x16xf32>,
    %c0_14 = arith.constant 0 : index
    %c1 = arith.constant 1 : index
    %c0_15 = arith.constant 0 : index
    %c0_16 = arith.constant 0 : index
    %14 = vector.load %arg9[%c0_14, %c1, %c0_15, %c0_16] : memref<1x5x8x16xf32, #tpu.memory_space<vmem>>, vector<1x1x8x16xf32>
    %15 = vector.shape_cast %14 : vector<1x1x8x16xf32> to vector<8x16xf32>
    %16 = arith.addf %15, %7#1 : vector<8x16xf32>
    %c0_17 = arith.constant 0 : index
    %c1_18 = arith.constant 1 : index
    %c0_19 = arith.constant 0 : index
    %c0_20 = arith.constant 0 : index
    %17 = vector.load %arg9[%c0_17, %c1_18, %c0_19, %c0_20] : memref<1x5x8x16xf32, #tpu.memory_space<vmem>>, vector<1x1x8x16xf32>
    %18 = vector.shape_cast %17 : vector<1x1x8x16xf32> to vector<8x16xf32>
    %19 = vector.shape_cast %16 : vector<8x16xf32> to vector<1x1x8x16xf32>
    tpu.vector_store %arg9[%c0_17, %c1_18, %c0_19, %c0_20], %19 {strides = array<i32>} : memref<1x5x8x16xf32, #tpu.memory_space<vmem>>, vector<1x1x8x16xf32>,
    %c0_21 = arith.constant 0 : index
    %c2 = arith.constant 2 : index
    %c0_22 = arith.constant 0 : index
    %c0_23 = arith.constant 0 : index
    %20 = vector.load %arg9[%c0_21, %c2, %c0_22, %c0_23] : memref<1x5x8x16xf32, #tpu.memory_space<vmem>>, vector<1x1x8x16xf32>
    %21 = vector.shape_cast %20 : vector<1x1x8x16xf32> to vector<8x16xf32>
    %22 = arith.addf %21, %7#2 : vector<8x16xf32>
    %c0_24 = arith.constant 0 : index
    %c2_25 = arith.constant 2 : index
    %c0_26 = arith.constant 0 : index
    %c0_27 = arith.constant 0 : index
    %23 = vector.load %arg9[%c0_24, %c2_25, %c0_26, %c0_27] : memref<1x5x8x16xf32, #tpu.memory_space<vmem>>, vector<1x1x8x16xf32>
    %24 = vector.shape_cast %23 : vector<1x1x8x16xf32> to vector<8x16xf32>
    %25 = vector.shape_cast %22 : vector<8x16xf32> to vector<1x1x8x16xf32>
    tpu.vector_store %arg9[%c0_24, %c2_25, %c0_26, %c0_27], %25 {strides = array<i32>} : memref<1x5x8x16xf32, #tpu.memory_space<vmem>>, vector<1x1x8x16xf32>,
    %c0_28 = arith.constant 0 : index
    %c3 = arith.constant 3 : index
    %c0_29 = arith.constant 0 : index
    %c0_30 = arith.constant 0 : index
    %26 = vector.load %arg9[%c0_28, %c3, %c0_29, %c0_30] : memref<1x5x8x16xf32, #tpu.memory_space<vmem>>, vector<1x1x8x16xf32>
    %27 = vector.shape_cast %26 : vector<1x1x8x16xf32> to vector<8x16xf32>
    %28 = arith.addf %27, %7#3 : vector<8x16xf32>
    %c0_31 = arith.constant 0 : index
    %c3_32 = arith.constant 3 : index
    %c0_33 = arith.constant 0 : index
    %c0_34 = arith.constant 0 : index
    %29 = vector.load %arg9[%c0_31, %c3_32, %c0_33, %c0_34] : memref<1x5x8x16xf32, #tpu.memory_space<vmem>>, vector<1x1x8x16xf32>
    %30 = vector.shape_cast %29 : vector<1x1x8x16xf32> to vector<8x16xf32>
    %31 = vector.shape_cast %28 : vector<8x16xf32> to vector<1x1x8x16xf32>
    tpu.vector_store %arg9[%c0_31, %c3_32, %c0_33, %c0_34], %31 {strides = array<i32>} : memref<1x5x8x16xf32, #tpu.memory_space<vmem>>, vector<1x1x8x16xf32>,
    %c0_35 = arith.constant 0 : index
    %c4 = arith.constant 4 : index
    %c0_36 = arith.constant 0 : index
    %c0_37 = arith.constant 0 : index
    %32 = vector.load %arg9[%c0_35, %c4, %c0_36, %c0_37] : memref<1x5x8x16xf32, #tpu.memory_space<vmem>>, vector<1x1x8x16xf32>
    %33 = vector.shape_cast %32 : vector<1x1x8x16xf32> to vector<8x16xf32>
    %34 = arith.addf %33, %7#4 : vector<8x16xf32>
    %c0_38 = arith.constant 0 : index
    %c4_39 = arith.constant 4 : index
    %c0_40 = arith.constant 0 : index
    %c0_41 = arith.constant 0 : index
    %35 = vector.load %arg9[%c0_38, %c4_39, %c0_40, %c0_41] : memref<1x5x8x16xf32, #tpu.memory_space<vmem>>, vector<1x1x8x16xf32>
    %36 = vector.shape_cast %35 : vector<1x1x8x16xf32> to vector<8x16xf32>
    %37 = vector.shape_cast %34 : vector<8x16xf32> to vector<1x1x8x16xf32>
    tpu.vector_store %arg9[%c0_38, %c4_39, %c0_40, %c0_41], %37 {strides = array<i32>} : memref<1x5x8x16xf32, #tpu.memory_space<vmem>>, vector<1x1x8x16xf32>,
    return
  }
  func.func @transform_0(%arg0: i32, %arg1: i32) -> (i32, i32, i32) {
    %c1_i32 = arith.constant 1 : i32
    %0 = arith.muli %arg0, %c1_i32 : i32
    %1 = arith.addi %0, %arg1 : i32
    %c0_i32 = arith.constant 0 : i32
    %c0_i32_0 = arith.constant 0 : i32
    %c0_i32_1 = arith.constant 0 : i32
    return %1, %c0_i32, %c0_i32_0 : i32, i32, i32
  }
  func.func @transform_1(%arg0: i32, %arg1: i32) -> (i32, i32) {
    %c0_i32 = arith.constant 0 : i32
    %c0_i32_0 = arith.constant 0 : i32
    %c0_i32_1 = arith.constant 0 : i32
    return %c0_i32, %c0_i32_0 : i32, i32
  }
  func.func @transform_2(%arg0: i32, %arg1: i32) -> (i32, i32) {
    %c0_i32 = arith.constant 0 : i32
    %c0_i32_0 = arith.constant 0 : i32
    %c0_i32_1 = arith.constant 0 : i32
    return %c0_i32, %c0_i32_0 : i32, i32
  }
  func.func @transform_3(%arg0: i32, %arg1: i32) -> (i32, i32, i32) {
    %c1_i32 = arith.constant 1 : i32
    %0 = arith.muli %arg0, %c1_i32 : i32
    %1 = arith.addi %0, %arg1 : i32
    %c0_i32 = arith.constant 0 : i32
    %c0_i32_0 = arith.constant 0 : i32
    %c0_i32_1 = arith.constant 0 : i32
    return %1, %c0_i32, %c0_i32_0 : i32, i32, i32
  }
  func.func @transform_4(%arg0: i32, %arg1: i32) -> (i32, i32) {
    %c0_i32 = arith.constant 0 : i32
    %c0_i32_0 = arith.constant 0 : i32
    %c0_i32_1 = arith.constant 0 : i32
    return %c0_i32, %c0_i32_0 : i32, i32
  }
  func.func @transform_5(%arg0: i32, %arg1: i32) -> (i32, i32) {
    %c0_i32 = arith.constant 0 : i32
    %c0_i32_0 = arith.constant 0 : i32
    %c0_i32_1 = arith.constant 0 : i32
    return %c0_i32, %c0_i32_0 : i32, i32
  }
  func.func @transform_6(%arg0: i32, %arg1: i32) -> (i32, i32, i32) {
    %c1_i32 = arith.constant 1 : i32
    %0 = arith.muli %arg0, %c1_i32 : i32
    %1 = arith.addi %0, %arg1 : i32
    %c0_i32 = arith.constant 0 : i32
    %c0_i32_0 = arith.constant 0 : i32
    %c0_i32_1 = arith.constant 0 : i32
    return %1, %c0_i32, %c0_i32_0 : i32, i32, i32
  }
  func.func @transform_7(%arg0: i32, %arg1: i32) -> (i32, i32, i32, i32) {
    %c0_i32 = arith.constant 0 : i32
    %c0_i32_0 = arith.constant 0 : i32
    %c0_i32_1 = arith.constant 0 : i32
    %c0_i32_2 = arith.constant 0 : i32
    return %arg0, %c0_i32, %c0_i32_0, %c0_i32_1 : i32, i32, i32, i32
  }
}

</mosaic_0001>

<bundles_post_ra>
// kernel: tpu_custom_call.1
= control target key start
LH: loop header
LB: loop body
LE: loop exit
PB: predicated region body
PF: predicated region fallthrough
CT: control target
= control target key end

     0   :  { %12 = vsyncpa [#allocation3], 0  ;;  %vm102_vm0 = vcmask 130048   ;;  %v647_v1 = vmov 0.0   ;;  %v708_v3 = vmov 0.0   ;;  %v710_v4 = vmov 0.0   ;;  %s822_s0 = inlined_call_operand.vmem [shape: bf16[2,8,8], index: 0, kind: input, shape index: {}]   ;;  %s823_s1 = inlined_call_operand.vmem [shape: bf16[16,8], index: 1, kind: input, shape index: {}]   ;;  %s824_s2 = inlined_call_operand.vmem [shape: bf16[8,16], index: 2, kind: input, shape index: {}]   ;;  %s825_s3 = inlined_call_operand.vmem [shape: bf16[2,4,4], index: 3, kind: input, shape index: {}]   ;;  %s826_s4 = inlined_call_operand.vmem [shape: bf16[16,4], index: 4, kind: input, shape index: {}]   ;;  %s827_s5 = inlined_call_operand.vmem [shape: bf16[4,16], index: 5, kind: input, shape index: {}]   ;;  %s828_s6 = inlined_call_operand.vmem [shape: bf16[2,16,16], index: 6, kind: input, shape index: {}]   ;;  %s829_s7 = inlined_call_operand.hbm [shape: f32[1,5,8,16], index: 7, kind: output, shape index: {}]  }
   0x1   :  { %v696_v0 = vld [vmem:[%s824_s2] sm:$0xf]  ;;  %103 = vst.msk [vmem:[#allocation2] sm:$0xff] %vm102_vm0, %v647_v1  ;;  %104 = vst.msk [vmem:[#allocation2 + $0x8] sm:$0xff] %vm102_vm0, %v647_v1  ;;  %v712_v5 = vmov 0.0   ;;  %v714_v6 = vmov 0.0  }
   0x2   :  { %105 = vst.msk [vmem:[#allocation2 + $0x10] sm:$0xff] %vm102_vm0, %v647_v1  ;;  %106 = vst.msk [vmem:[#allocation2 + $0x18] sm:$0xff] %vm102_vm0, %v647_v1  ;;  %v706_v2 = vld [vmem:[%s827_s5] sm:$0x3]  ;;  %v716_v7 = vmov 0.0   ;;  %s718_s2 = smov 0  }
   0x3   :  { %107 = vst.msk [vmem:[#allocation2 + $0x20] sm:$0xff] %vm102_vm0, %v647_v1 }
   0x4 LB: > { %vm128_vm1 = vcmask 1043456   ;;  %vm180_vm2 = vcmask 1041408   ;;  %v648_v8 = vmov 0.0   ;;  %s469_s5 = sshll.u32 %s645_s2, 2  ;;  %vm124_vm3 = vcmask 64512   ;;  %s480_s28 = sshll.u32 %s645_s2, 3  ;;  %s645_s2 = sphi %s718_s2, %s115_s2   ;;  %v641_v7 = vphi %v716_v7, %v835_v7   ;;  %v637_v6 = vphi %v714_v6, %v834_v6   ;;  %v633_v5 = vphi %v712_v5, %v833_v5   ;;  %v629_v4 = vphi %v710_v4, %v832_v4   ;;  %v625_v3 = vphi %v708_v3, %v831_v3  }
   0x5   : > { %489 = vmatprep.subr.bf16.mxu0 %v648_v8  ;;  %495 = vmatprep.subr.bf16.mxu1 %v648_v8  ;;  %v130_v9 = vsel %vm128_vm1, %v696_v0, 0  ;;  %v182_v10 = vsel %vm180_vm2, %v706_v2, 0  ;;  %vm649_vm4 = vmmov 0   ;;  %s122_s8 = scalar_lea.vmem %s822_s0, %s469_s5  ;;  %s228_s11 = scalar_lea.vmem %s828_s6, %s480_s28  ;;  %vm176_vm5 = vcmask 31744   ;;  %v568_v29 = vld [vmem:[%s823_s1] sm:$0xff]  }
   0x6   : > { %490 = vmatpush3.bf16.msra.mxu0 %v130_v9  ;;  %496 = vmatpush3.bf16.msra.mxu1 %v182_v10  ;;  %v123_v11 = vld [vmem:[%s122_s8] sm:$0xf]  ;;  %s471_s12 = sshll.u32 %s645_s2, 1  ;;  %s115_s2 = sadd.s32 1, %s645_s2  }
   0x7   : > { %491 = vmatprep.mubr.msk.bf16.mxu0 %vm649_vm4, %v648_v8  ;;  %497 = vmatprep.mubr.msk.bf16.mxu1 %vm649_vm4, %v648_v8  ;;  %v750_v12 = vld [vmem:[%s228_s11] sm:$0xff]   ;;  %s174_s15 = scalar_lea.vmem %s825_s3, %s471_s12  ;;  %p112_p0 = scmp.ge.s32.totalorder %s115_s2, 2  }
   0x8   : > { %501 = vmatprep.subr.bf16.mxu0 %v648_v8  ;;  %507 = vmatprep.subr.bf16.mxu1 %v648_v8  ;;  %v382_v13 = vunpack.c.l.bf16 %v750_v12  ;;  %v383_v14 = vunpack.c.h.bf16 %v750_v12  ;;  %v175_v15 = vld [vmem:[%s174_s15] sm:$0x3]  ;;  %s650_s20 = smov (%p112_p0), [#allocation2]  }
   0x9   : > { %492 = vmatmul.mubr.msk.bf16.vlgmr.msra.gmra.mrb[0].mxu0 %vm124_vm3, %v123_v11  ;;  %498 = vmatmul.mubr.msk.bf16.vlgmr.msra.gmra.mrb[0].mxu1 %vm176_vm5, %v175_v15  ;;  %v569_v33 = vld [vmem:[%s826_s4] sm:$0xff]   ;;  %s413_s21 = sshll.u32 (%p112_p0), %s650_s20, 4  ;;  %s414_s21 = int_to_ptr.vmem [resolvable:$true] %s413_s21 }
   0xa   : > { %503 = vmatprep.mubr.msk.bf16.mxu0 %vm649_vm4, %v648_v8  ;;  %v384_v16 = vsel %vm102_vm0, %v382_v13, 0.0  ;;  %v385_v17 = vsel %vm102_vm0, %v383_v14, 0.0  ;;  %509 = vmatprep.mubr.msk.bf16.mxu1 %vm649_vm4, %v648_v8  ;;  %s575_s0 = scalar_lea.vmem (%p112_p0), %s414_s21, 640  ;;  %p580_p2 = scmp.lt.s32.totalorder (%p112_p0), %s414_s21, %s414_s21 }
   0xb   : > { %v386_v18 = vadd.f32 %v385_v17, %v384_v16  ;;  %p576_p1 = scmp.ne.s32.totalorder (%p112_p0), %s414_s21, %s575_s0  ;;  %p581_p3 = scmp.lt.s32.totalorder (%p112_p0), %s575_s0, %s575_s0 }
   0xd   : > { %v764_v3 = vadd.f32 %v625_v3, %v386_v18   ;;  %p582_p4 = por (%p112_p0), %p581_p3, %p580_p2 }
   0xf   : > { %v830_v19 = vmov %v764_v3  ;;  %p583_p5 = pnand (%p112_p0), %p582_p4, %p576_p1 }
  0xdc   : > { %v166_v20 = vpop.f32.mrb[0].mxu0  ;;  %v218_v23 = vpop.f32.mrb[0].mxu1 }
  0xdd   : > { %v172_v21 = vpack.c.bf16 %v166_v20, %v166_v20  ;;  %v493_v22 = vpop.f32.mrb[1].mxu0  ;;  %v224_v26 = vpack.c.bf16 %v218_v23, %v218_v23  ;;  %v499_v27 = vpop.f32.mrb[1].mxu1 }
  0xde   : > { %v169_v24 = vpop.f32.mrb[2].mxu0  ;;  %v221_v30 = vpop.f32.mrb[2].mxu1  ;;  %v397_v22 = vld [vmem:[#allocation2 + $0x10] sm:$0xff] (%p112_p0)  ;;  %v405_v27 = vld [vmem:[#allocation2 + $0x20] sm:$0xff] (%p112_p0) }
  0xdf   : > { %v242_v25 = vsel %vm128_vm1, %v172_v21, 0  ;;  %v494_v28 = vpop.f32.mrb[3].mxu0  ;;  %v321_v31 = vsel %vm180_vm2, %v224_v26, 0  ;;  %v500_v32 = vpop.f32.mrb[3].mxu1  ;;  %v393_v21 = vld [vmem:[#allocation2 + $0x8] sm:$0xff] (%p112_p0)  ;;  %v401_v26 = vld [vmem:[#allocation2 + $0x18] sm:$0xff] (%p112_p0) }
  0xe0   : > { %502 = vmatpush3.bf16.msra.mxu0 %v242_v25  ;;  %508 = vmatpush3.bf16.msra.mxu1 %v321_v31 }
  0xe3   : > { %504 = vmatmul.mubr.msk.bf16.vlgmr.msra.gmra.mrb[4].mxu0 %vm124_vm3, %v568_v29  ;;  %510 = vmatmul.mubr.msk.bf16.vlgmr.msra.gmra.mrb[4].mxu1 %vm176_vm5, %v569_v33  ;;  %v406_v29 = vadd.f32 (%p112_p0), %v405_v27, %v830_v19 }
  0xe5   :  { %407 = vst.msk [vmem:[#allocation2 + $0x20] sm:$0xff] (%p112_p0), %vm102_vm0, %v406_v29 }
 0x1b6   : > { %v278_v34 = vpop.f32.mrb[4].mxu0  ;;  %v357_v36 = vpop.f32.mrb[4].mxu1 }
 0x1b7   : > { %v505_v35 = vpop.f32.mrb[5].mxu0  ;;  %v511_v38 = vpop.f32.mrb[5].mxu1 }
 0x1b8   : > { %v281_v37 = vpop.f32.mrb[6].mxu0  ;;  %v360_v41 = vpop.f32.mrb[6].mxu1 }
 0x1b9   : > { %v285_v39 = vpack.c.bf16 %v281_v37, %v278_v34  ;;  %v506_v40 = vpop.f32.mrb[7].mxu0  ;;  %v364_v43 = vpack.c.bf16 %v360_v41, %v357_v36  ;;  %v512_v44 = vpop.f32.mrb[7].mxu1 }
 0x1bb   : > { %v286_v42 = vmul.bf16 1056980736, %v285_v39  ;;  %v365_v45 = vmul.bf16 1056980736, %v364_v43 }
 0x1bd   : > { %571 = vtanh.bf16 %v286_v42 }
 0x1be   : > { %573 = vtanh.bf16 %v365_v45 }
 0x1c8   : > { %v572_v46 = vpop.eup %571 }
 0x1c9   : > { %v288_v47 = vmul.bf16 1056980736, %v572_v46  ;;  %v574_v48 = vpop.eup %573 }
 0x1ca   : > { %v367_v50 = vmul.bf16 1056980736, %v574_v48 }
 0x1cb   : > { %v289_v49 = vadd.bf16 1056980736, %v288_v47 }
 0x1cc   : > { %v368_v54 = vadd.bf16 1056980736, %v367_v50 }
 0x1cd   : > { %v296_v51 = vmul.bf16 %v289_v49, %v750_v12  ;;  %v304_v52 = vunpack.c.l.bf16 %v289_v49  ;;  %v305_v53 = vunpack.c.h.bf16 %v289_v49 }
 0x1ce   : > { %v369_v60 = vmul.bf16 %v368_v54, %v750_v12  ;;  %v376_v61 = vunpack.c.l.bf16 %v368_v54  ;;  %v377_v62 = vunpack.c.h.bf16 %v368_v54 }
 0x1cf   : > { %v297_v55 = vunpack.c.l.bf16 %v296_v51  ;;  %v298_v56 = vunpack.c.h.bf16 %v296_v51  ;;  %v306_v57 = vsel %vm102_vm0, %v304_v52, 0.0  ;;  %v307_v58 = vsel %vm102_vm0, %v305_v53, 0.0 }
 0x1d0   : > { %v308_v59 = vadd.f32 %v307_v58, %v306_v57  ;;  %v370_v9 = vunpack.c.l.bf16 %v369_v60  ;;  %v371_v10 = vunpack.c.h.bf16 %v369_v60  ;;  %v378_v11 = vsel %vm102_vm0, %v376_v61, 0.0 }
 0x1d1   : > { %v300_v63 = vsel %vm102_vm0, %v297_v55, 0.0  ;;  %v301_v1 = vsel %vm102_vm0, %v298_v56, 0.0  ;;  %v379_v13 = vsel %vm102_vm0, %v377_v62, 0.0  ;;  %114 = sbr.rel (!%p112_p0) target bundleno = 4 (0x4), region = 75 }
 0x1d2   : > { %v302_v3 = vadd.f32 %v301_v1, %v300_v63  ;;  %v309_v8 = vadd.f32 %v637_v6, %v308_v59   ;;  %v372_v15 = vsel %vm102_vm0, %v370_v9, 0.0  ;;  %v373_v12 = vsel %vm102_vm0, %v371_v10, 0.0 }
 0x1d3   : > { %v380_v16 = vadd.f32 %v379_v13, %v378_v11  ;;  %v374_v17 = vadd.f32 %v373_v12, %v372_v15 }
 0x1d4   : > { %v303_v14 = vadd.f32 %v641_v7, %v302_v3   ;;  %v831_v3 = vmov %v830_v19  ;;  %v834_v6 = vmov %v309_v8  ;;  %v394_v24 = vadd.f32 (%p112_p0), %v393_v21, %v309_v8 }
 0x1d5   : > { %v381_v18 = vadd.f32 %v629_v4, %v380_v16   ;;  %v375_v20 = vadd.f32 %v633_v5, %v374_v17  }
 0x1d6   : > { %v835_v7 = vmov %v303_v14  ;;  %395 = vst.msk [vmem:[#allocation2 + $0x8] sm:$0xff] (%p112_p0), %vm102_vm0, %v394_v24 }
 0x1d7   : > { %v832_v4 = vmov %v381_v18  ;;  %v833_v5 = vmov %v375_v20  ;;  %v388_v7 = vld [vmem:[#allocation2] sm:$0xff] (%p112_p0)  ;;  %v398_v25 = vadd.f32 (%p112_p0), %v397_v22, %v375_v20  ;;  %v402_v28 = vadd.f32 (%p112_p0), %v401_v26, %v381_v18 }
 0x1d8   :  { %v389_v23 = vadd.f32 %v388_v7, %v303_v14 }
 0x1d9   :  { %399 = vst.msk [vmem:[#allocation2 + $0x10] sm:$0xff] %vm102_vm0, %v398_v25  ;;  %403 = vst.msk [vmem:[#allocation2 + $0x18] sm:$0xff] %vm102_vm0, %v402_v28 }
 0x1da   :  { %391 = vst.msk [vmem:[#allocation2] sm:$0xff] %vm102_vm0, %v389_v23 }
 0x1db   :  { %586 = shalt.err (!%p583_p5)
}
 0x1dc   :  { %s587_s4 = scalar_lea.hbm %s829_s7, 640 }
 0x1dd   :  { %p588_p6 = scmp.ne.s32.totalorder %s829_s7, %s587_s4  ;;  %p591_p7 = scmp.lt.u32.totalorder %s587_s4, %s829_s7 }
 0x1df   :  { %p593_p8 = pnand %p591_p7, %p588_p6 }
 0x1e1   :  { %596 = shalt.err (!%p593_p8)
}
 0x1e2   :  { %s651_s25 = smov 128   ;;  %s652_s26 = smov 8  }
 0x1e3   :  { %419 = dma.vmem_to_hbm [thread:$0]  %s414_s21, 640, %s829_s7, [#allocation3], %s651_s25, %s651_s25, %s652_s26  }
 0x1e4   :  { %621 = dma.done.wait [#allocation3], 640  }
 0x1e5   :  { %622 = vsyncadd [#allocation3], 4294966656 }
 0x1e6   :  { %423 = vsyncpa [#allocation3], 1 }

</bundles_post_ra>
